<compile_context>
chip_gen: v5e
topology: v5e:2x2
jax: 0.10.0
libtpu: 0.0.40
codegen_flags: <defaults>
</compile_context>

<pallas_src>
import functools

import jax
import jax.numpy as jnp
from jax.experimental import pallas as pl
from jax.experimental.pallas import tpu as pltpu


def _round_up(x, m):
    return (x + m - 1) // m * m


def _conv1d_tile_kernel(x_ref, h_ref, w_ref, b_ref, o_ref, win_ref, acc_ref,
                        *, dilation):
    # x_ref  : (1, 1, TL, C_in_p)     main input tile j
    # h_ref  : (1, 1, HALO8, C_in_p)  halo = first HALO8 rows of tile j+1
    # w_ref  : (K, C_in_p, C_out_p)   weights, resident across the grid
    # b_ref  : (1, C_out_p)           float32 bias
    # o_ref  : (1, TL, C_out_p)       output tile
    # win_ref: (TL + HALO8, C_in_p)   VMEM scratch: contiguous input window
    # acc_ref: (TL, C_out_p)          VMEM scratch: f32 accumulator
    tl = o_ref.shape[1]
    k_taps = w_ref.shape[0]

    # Stitch main tile + halo into one contiguous window (bounded VMEM copy,
    # avoids K independent unaligned dynamic slices straddling tile borders).
    win_ref[:tl, :] = x_ref[0, 0]
    win_ref[tl:, :] = h_ref[0, 0]

    # Bias-initialized f32 accumulator in VMEM (never spills the vreg file).
    acc_ref[...] = jnp.broadcast_to(b_ref[...], acc_ref.shape).astype(jnp.float32)

    # Hot path: K accumulated MXU matmuls (K static -> unrolled).
    # TODO(synk): for very small C_in (e.g. location-layer 2->32) folding K
    # into the contraction (im2col into a (TL, K*C_in) scratch) would fill
    # the MXU better; per-tap form kept since it is optimal for 512->512.
    for k in range(k_taps):
        off = k * dilation
        acc_ref[...] += jnp.dot(
            win_ref[off:off + tl, :], w_ref[k],
            preferred_element_type=jnp.float32)

    o_ref[0] = acc_ref[...].astype(o_ref.dtype)


def conv_norm_forward_nlc(x_nlc, weight, bias=None, *, stride=1, padding=None,
                          dilation=1, compute_dtype=None, tile_l=256):
    """Channels-last conv. x_nlc: [B, L, C_in], weight: [C_out, C_in, K].

    Returns [B, L_out, C_out].  Stacked ConvNorm layers should call this
    directly to avoid per-layer NCL<->NLC transposes.
    """
    c_out, c_in, k = weight.shape
    if padding is None:
        assert k % 2 == 1
        padding = int(dilation * (k - 1) / 2)
    # TODO(synk): kernel path implements stride=1 only (ConvNorm default).
    assert stride == 1, "Pallas kernel implements stride=1 (module default)."

    b, l, _ = x_nlc.shape
    l_out = (l + 2 * padding - dilation * (k - 1) - 1) // stride + 1
    assert l_out >= 1

    out_dtype = x_nlc.dtype
    cdt = jnp.dtype(compute_dtype) if compute_dtype is not None else jnp.dtype(x_nlc.dtype)

    halo = dilation * (k - 1)
    halo8 = max(8, _round_up(halo, 8))

    # Sequence tile: multiple of 8, >= halo, bounded (~256 rows keeps
    # 2x double-buffered tiles + resident weights well under 32 MiB VMEM,
    # valid on v7x's 64 MiB as well as v5e/v6e's 128 MiB).
    tl = min(_round_up(tile_l, 8), _round_up(l_out, 8))
    tl = max(tl, halo8)
    num_tiles = pl.cdiv(l_out, tl)

    # Lane/sublane padding: C_out -> multiple of 128 (lane-dense stores),
    # C_in -> multiple of 8 (sublane alignment).  Sliced off afterwards.
    c_in_p = _round_up(c_in, 8)
    c_out_p = _round_up(c_out, 128)

    # ---- wrapper glue (plain JAX): pad + reshape into tiles ---------------
    # +1 trailing zero tile so the halo block index (j + 1) is always valid.
    l_total = (num_tiles + 1) * tl
    x_p = jnp.pad(x_nlc.astype(cdt),
                  ((0, 0), (padding, l_total - l - padding), (0, c_in_p - c_in)))
    x_blocks = x_p.reshape(b, num_tiles + 1, tl, c_in_p)

    w_kio = jnp.transpose(weight, (2, 1, 0))                  # [K, C_in, C_out]
    w_p = jnp.pad(w_kio, ((0, 0), (0, c_in_p - c_in),
                          (0, c_out_p - c_out))).astype(cdt)

    if bias is None:
        bias = jnp.zeros((c_out,), jnp.float32)
    b_p = jnp.pad(bias.astype(jnp.float32), (0, c_out_p - c_out)).reshape(1, c_out_p)

    kernel = functools.partial(_conv1d_tile_kernel, dilation=dilation)

    itemsize = jnp.dtype(cdt).itemsize
    cost = pl.CostEstimate(
        flops=2 * b * l_out * k * c_in * c_out,
        transcendentals=0,
        bytes_accessed=(x_blocks.size * itemsize
                        + w_p.size * itemsize
                        + b * num_tiles * tl * c_out_p * jnp.dtype(out_dtype).itemsize),
    )

    out_nlc = pl.pallas_call(
        kernel,
        out_shape=jax.ShapeDtypeStruct((b, num_tiles * tl, c_out_p), out_dtype),
        grid_spec=pltpu.PrefetchScalarGridSpec(
            num_scalar_prefetch=0,
            grid=(b, num_tiles),
            in_specs=[
                # main tile j
                pl.BlockSpec((1, 1, tl, c_in_p), lambda i, j: (i, j, 0, 0)),
                # halo: first halo8 rows of tile j+1 (same array passed again)
                pl.BlockSpec((1, 1, halo8, c_in_p), lambda i, j: (i, j + 1, 0, 0)),
                # weights + bias resident across the whole grid
                pl.BlockSpec((k, c_in_p, c_out_p), lambda i, j: (0, 0, 0)),
                pl.BlockSpec((1, c_out_p), lambda i, j: (0, 0)),
            ],
            out_specs=pl.BlockSpec((1, tl, c_out_p), lambda i, j: (i, j, 0)),
            scratch_shapes=[
                pltpu.VMEM((tl + halo8, c_in_p), cdt),        # input window
                pltpu.VMEM((tl, c_out_p), jnp.float32),       # f32 accumulator
            ],
        ),
        compiler_params=pltpu.CompilerParams(
            dimension_semantics=("parallel", "parallel"),
            vmem_limit_bytes=32 * 1024 * 1024,
        ),
        cost_estimate=cost,
    )(x_blocks, x_blocks, w_p, b_p)

    return out_nlc[:, :l_out, :c_out]


def conv_norm_forward(x, weight, bias=None, *, stride=1, padding=None,
                      dilation=1, compute_dtype=None, tile_l=256):
    """x: [B, C_in, L] (PyTorch NCL), weight: [C_out, C_in, K] -> [B, C_out, L_out]."""
    x_nlc = jnp.transpose(x, (0, 2, 1))                       # boundary-only transpose
    out_nlc = conv_norm_forward_nlc(
        x_nlc, weight, bias, stride=stride, padding=padding, dilation=dilation,
        compute_dtype=compute_dtype, tile_l=tile_l)
    return jnp.transpose(out_nlc, (0, 2, 1))


def init_conv_norm_params(key, in_channels, out_channels, kernel_size,
                          w_init_gain="linear"):
    """Deterministic synthetic init matching the module's __init__ shapes."""
    kw, kb = jax.random.split(key)
    gain = 1.0  # calculate_gain('linear') == 1.0
    fan_in = in_channels * kernel_size
    fan_out = out_channels * kernel_size
    bound_w = gain * jnp.sqrt(6.0 / (fan_in + fan_out))
    weight = jax.random.uniform(
        kw, (out_channels, in_channels, kernel_size),
        minval=-bound_w, maxval=bound_w, dtype=jnp.float32)
    bound_b = 1.0 / jnp.sqrt(fan_in)
    bias = jax.random.uniform(
        kb, (out_channels,), minval=-bound_b, maxval=bound_b, dtype=jnp.float32)
    return weight, bias


if __name__ == "__main__":
    key = jax.random.PRNGKey(0)
    k_x, k_x2, k_p = jax.random.split(key, 3)

    B, C_IN, C_OUT, L, K = 2, 4, 8, 16, 5  # small shapes; K odd -> 'same' pad
    weight, bias = init_conv_norm_params(k_p, C_IN, C_OUT, K)

    def torch_ref(xin):
        return jax.lax.conv_general_dilated(
            xin, weight, window_strides=(1,), padding=[(K // 2, K // 2)],
            dimension_numbers=("NCH", "OIH", "NCH"),
        ) + bias[None, :, None]

    # --- check 1: single L tile, f32 path ---------------------------------
    x = jax.random.normal(k_x, (B, C_IN, L), dtype=jnp.float32)
    out = jax.block_until_ready(conv_norm_forward(x, weight, bias))
    assert out.shape == (B, C_OUT, L)
    assert jnp.allclose(out, torch_ref(x), atol=1e-5, rtol=1e-5)

    # --- check 2: multiple L tiles (exercises halo across tiles), f32 ------
    L2 = 40
    x2 = jax.random.normal(k_x2, (B, C_IN, L2), dtype=jnp.float32)
    out2 = jax.block_until_ready(conv_norm_forward(x2, weight, bias, tile_l=16))
    assert out2.shape == (B, C_OUT, L2)
    assert jnp.allclose(out2, torch_ref(x2), atol=1e-5, rtol=1e-5)

    # --- check 3: bf16 compute path (f32 accumulate), loose tolerance ------
    out2_bf16 = jax.block_until_ready(
        conv_norm_forward(x2, weight, bias, compute_dtype=jnp.bfloat16, tile_l=16))
    assert out2_bf16.shape == (B, C_OUT, L2)
    assert jnp.allclose(out2_bf16, torch_ref(x2), atol=5e-2, rtol=5e-2)

    print("KERNEL_OK")
</pallas_src>

<mosaic_0001>
module attributes {stable_mosaic.version = 11 : i64} {
  func.func @_conv1d_tile_kernel(%arg0: i32, %arg1: i32, %arg2: memref<1x1x16x8xf32, #tpu.memory_space<vmem>>, %arg3: memref<1x1x8x8xf32, #tpu.memory_space<vmem>>, %arg4: memref<5x8x128xf32, #tpu.memory_space<vmem>>, %arg5: memref<1x128xf32, #tpu.memory_space<vmem>>, %arg6: memref<1x16x128xf32, #tpu.memory_space<vmem>>, %arg7: memref<24x8xf32, #tpu.memory_space<vmem>>, %arg8: memref<16x128xf32, #tpu.memory_space<vmem>>) attributes {dimension_semantics = [#tpu.dimension_semantics<parallel>, #tpu.dimension_semantics<parallel>], iteration_bounds = array<i64: 2, 1>, scalar_prefetch = 0 : i64, scratch_operands = 2 : i64, tpu.core_type = #tpu.core_type<tc>, window_params = [{transform_indices = @transform_0, window_bounds = array<i64: 1, 1, 16, 8>}, {transform_indices = @transform_1, window_bounds = array<i64: 1, 1, 8, 8>}, {pipeline_mode = #tpu.pipeline_mode<synchronous>, transform_indices = @transform_2, window_bounds = array<i64: 5, 8, 128>}, {pipeline_mode = #tpu.pipeline_mode<synchronous>, transform_indices = @transform_3, window_bounds = array<i64: 1, 128>}, {transform_indices = @transform_4, window_bounds = array<i64: 1, 16, 128>}]} {
    %c0 = arith.constant 0 : index
    %c0_0 = arith.constant 0 : index
    %c0_1 = arith.constant 0 : index
    %c0_2 = arith.constant 0 : index
    %0 = vector.load %arg2[%c0, %c0_0, %c0_1, %c0_2] : memref<1x1x16x8xf32, #tpu.memory_space<vmem>>, vector<1x1x16x8xf32>
    %1 = vector.shape_cast %0 : vector<1x1x16x8xf32> to vector<16x8xf32>
    %c0_3 = arith.constant 0 : index
    %c0_4 = arith.constant 0 : index
    %2 = vector.load %arg7[%c0_3, %c0_4] : memref<24x8xf32, #tpu.memory_space<vmem>>, vector<16x8xf32>
    tpu.vector_store %arg7[%c0_3, %c0_4], %1 {strides = array<i32>} : memref<24x8xf32, #tpu.memory_space<vmem>>, vector<16x8xf32>,
    %c0_5 = arith.constant 0 : index
    %c0_6 = arith.constant 0 : index
    %c0_7 = arith.constant 0 : index
    %c0_8 = arith.constant 0 : index
    %3 = vector.load %arg3[%c0_5, %c0_6, %c0_7, %c0_8] : memref<1x1x8x8xf32, #tpu.memory_space<vmem>>, vector<1x1x8x8xf32>
    %4 = vector.shape_cast %3 : vector<1x1x8x8xf32> to vector<8x8xf32>
    %c16 = arith.constant 16 : index
    %c0_9 = arith.constant 0 : index
    %5 = vector.load %arg7[%c16, %c0_9] : memref<24x8xf32, #tpu.memory_space<vmem>>, vector<8x8xf32>
    tpu.vector_store %arg7[%c16, %c0_9], %4 {strides = array<i32>} : memref<24x8xf32, #tpu.memory_space<vmem>>, vector<8x8xf32>,
    %c0_10 = arith.constant 0 : index
    %c0_11 = arith.constant 0 : index
    %6 = vector.load %arg5[%c0_10, %c0_11] : memref<1x128xf32, #tpu.memory_space<vmem>>, vector<1x128xf32>
    %7 = vector.shape_cast %6 : vector<1x128xf32> to vector<1x128xf32>
    %8 = vector.broadcast %7 : vector<1x128xf32> to vector<16x128xf32>
    %c0_12 = arith.constant 0 : index
    %c0_13 = arith.constant 0 : index
    %9 = vector.load %arg8[%c0_12, %c0_13] : memref<16x128xf32, #tpu.memory_space<vmem>>, vector<16x128xf32>
    tpu.vector_store %arg8[%c0_12, %c0_13], %8 {strides = array<i32>} : memref<16x128xf32, #tpu.memory_space<vmem>>, vector<16x128xf32>,
    %c0_14 = arith.constant 0 : index
    %c0_15 = arith.constant 0 : index
    %10 = vector.load %arg8[%c0_14, %c0_15] : memref<16x128xf32, #tpu.memory_space<vmem>>, vector<16x128xf32>
    %c0_16 = arith.constant 0 : index
    %c0_17 = arith.constant 0 : index
    %11 = vector.load %arg7[%c0_16, %c0_17] : memref<24x8xf32, #tpu.memory_space<vmem>>, vector<16x8xf32>
    %c0_18 = arith.constant 0 : index
    %c0_19 = arith.constant 0 : index
    %c0_20 = arith.constant 0 : index
    %12 = vector.load %arg4[%c0_18, %c0_19, %c0_20] : memref<5x8x128xf32, #tpu.memory_space<vmem>>, vector<1x8x128xf32>
    %13 = vector.shape_cast %12 : vector<1x8x128xf32> to vector<8x128xf32>
    %cst = arith.constant dense<0.000000e+00> : vector<16x128xf32>
    %14 = tpu.matmul %11, %13, %cst {dimension_numbers = #tpu.dot_dimension_numbers<[1], [0], [0], [1], [0, 0, 1, 1], [], []>} : vector<16x8xf32>, vector<8x128xf32>, vector<16x128xf32> -> vector<16x128xf32>
    %15 = arith.addf %10, %14 : vector<16x128xf32>
    %c0_21 = arith.constant 0 : index
    %c0_22 = arith.constant 0 : index
    %16 = vector.load %arg8[%c0_21, %c0_22] : memref<16x128xf32, #tpu.memory_space<vmem>>, vector<16x128xf32>
    tpu.vector_store %arg8[%c0_21, %c0_22], %15 {strides = array<i32>} : memref<16x128xf32, #tpu.memory_space<vmem>>, vector<16x128xf32>,
    %c0_23 = arith.constant 0 : index
    %c0_24 = arith.constant 0 : index
    %17 = vector.load %arg8[%c0_23, %c0_24] : memref<16x128xf32, #tpu.memory_space<vmem>>, vector<16x128xf32>
    %c1 = arith.constant 1 : index
    %c0_25 = arith.constant 0 : index
    %18 = vector.load %arg7[%c1, %c0_25] : memref<24x8xf32, #tpu.memory_space<vmem>>, vector<16x8xf32>
    %c1_26 = arith.constant 1 : index
    %c0_27 = arith.constant 0 : index
    %c0_28 = arith.constant 0 : index
    %19 = vector.load %arg4[%c1_26, %c0_27, %c0_28] : memref<5x8x128xf32, #tpu.memory_space<vmem>>, vector<1x8x128xf32>
    %20 = vector.shape_cast %19 : vector<1x8x128xf32> to vector<8x128xf32>
    %cst_29 = arith.constant dense<0.000000e+00> : vector<16x128xf32>
    %21 = tpu.matmul %18, %20, %cst_29 {dimension_numbers = #tpu.dot_dimension_numbers<[1], [0], [0], [1], [0, 0, 1, 1], [], []>} : vector<16x8xf32>, vector<8x128xf32>, vector<16x128xf32> -> vector<16x128xf32>
    %22 = arith.addf %17, %21 : vector<16x128xf32>
    %c0_30 = arith.constant 0 : index
    %c0_31 = arith.constant 0 : index
    %23 = vector.load %arg8[%c0_30, %c0_31] : memref<16x128xf32, #tpu.memory_space<vmem>>, vector<16x128xf32>
    tpu.vector_store %arg8[%c0_30, %c0_31], %22 {strides = array<i32>} : memref<16x128xf32, #tpu.memory_space<vmem>>, vector<16x128xf32>,
    %c0_32 = arith.constant 0 : index
    %c0_33 = arith.constant 0 : index
    %24 = vector.load %arg8[%c0_32, %c0_33] : memref<16x128xf32, #tpu.memory_space<vmem>>, vector<16x128xf32>
    %c2 = arith.constant 2 : index
    %c0_34 = arith.constant 0 : index
    %25 = vector.load %arg7[%c2, %c0_34] : memref<24x8xf32, #tpu.memory_space<vmem>>, vector<16x8xf32>
    %c2_35 = arith.constant 2 : index
    %c0_36 = arith.constant 0 : index
    %c0_37 = arith.constant 0 : index
    %26 = vector.load %arg4[%c2_35, %c0_36, %c0_37] : memref<5x8x128xf32, #tpu.memory_space<vmem>>, vector<1x8x128xf32>
    %27 = vector.shape_cast %26 : vector<1x8x128xf32> to vector<8x128xf32>
    %cst_38 = arith.constant dense<0.000000e+00> : vector<16x128xf32>
    %28 = tpu.matmul %25, %27, %cst_38 {dimension_numbers = #tpu.dot_dimension_numbers<[1], [0], [0], [1], [0, 0, 1, 1], [], []>} : vector<16x8xf32>, vector<8x128xf32>, vector<16x128xf32> -> vector<16x128xf32>
    %29 = arith.addf %24, %28 : vector<16x128xf32>
    %c0_39 = arith.constant 0 : index
    %c0_40 = arith.constant 0 : index
    %30 = vector.load %arg8[%c0_39, %c0_40] : memref<16x128xf32, #tpu.memory_space<vmem>>, vector<16x128xf32>
    tpu.vector_store %arg8[%c0_39, %c0_40], %29 {strides = array<i32>} : memref<16x128xf32, #tpu.memory_space<vmem>>, vector<16x128xf32>,
    %c0_41 = arith.constant 0 : index
    %c0_42 = arith.constant 0 : index
    %31 = vector.load %arg8[%c0_41, %c0_42] : memref<16x128xf32, #tpu.memory_space<vmem>>, vector<16x128xf32>
    %c3 = arith.constant 3 : index
    %c0_43 = arith.constant 0 : index
    %32 = vector.load %arg7[%c3, %c0_43] : memref<24x8xf32, #tpu.memory_space<vmem>>, vector<16x8xf32>
    %c3_44 = arith.constant 3 : index
    %c0_45 = arith.constant 0 : index
    %c0_46 = arith.constant 0 : index
    %33 = vector.load %arg4[%c3_44, %c0_45, %c0_46] : memref<5x8x128xf32, #tpu.memory_space<vmem>>, vector<1x8x128xf32>
    %34 = vector.shape_cast %33 : vector<1x8x128xf32> to vector<8x128xf32>
    %cst_47 = arith.constant dense<0.000000e+00> : vector<16x128xf32>
    %35 = tpu.matmul %32, %34, %cst_47 {dimension_numbers = #tpu.dot_dimension_numbers<[1], [0], [0], [1], [0, 0, 1, 1], [], []>} : vector<16x8xf32>, vector<8x128xf32>, vector<16x128xf32> -> vector<16x128xf32>
    %36 = arith.addf %31, %35 : vector<16x128xf32>
    %c0_48 = arith.constant 0 : index
    %c0_49 = arith.constant 0 : index
    %37 = vector.load %arg8[%c0_48, %c0_49] : memref<16x128xf32, #tpu.memory_space<vmem>>, vector<16x128xf32>
    tpu.vector_store %arg8[%c0_48, %c0_49], %36 {strides = array<i32>} : memref<16x128xf32, #tpu.memory_space<vmem>>, vector<16x128xf32>,
    %c0_50 = arith.constant 0 : index
    %c0_51 = arith.constant 0 : index
    %38 = vector.load %arg8[%c0_50, %c0_51] : memref<16x128xf32, #tpu.memory_space<vmem>>, vector<16x128xf32>
    %c4 = arith.constant 4 : index
    %c0_52 = arith.constant 0 : index
    %39 = vector.load %arg7[%c4, %c0_52] : memref<24x8xf32, #tpu.memory_space<vmem>>, vector<16x8xf32>
    %c4_53 = arith.constant 4 : index
    %c0_54 = arith.constant 0 : index
    %c0_55 = arith.constant 0 : index
    %40 = vector.load %arg4[%c4_53, %c0_54, %c0_55] : memref<5x8x128xf32, #tpu.memory_space<vmem>>, vector<1x8x128xf32>
    %41 = vector.shape_cast %40 : vector<1x8x128xf32> to vector<8x128xf32>
    %cst_56 = arith.constant dense<0.000000e+00> : vector<16x128xf32>
    %42 = tpu.matmul %39, %41, %cst_56 {dimension_numbers = #tpu.dot_dimension_numbers<[1], [0], [0], [1], [0, 0, 1, 1], [], []>} : vector<16x8xf32>, vector<8x128xf32>, vector<16x128xf32> -> vector<16x128xf32>
    %43 = arith.addf %38, %42 : vector<16x128xf32>
    %c0_57 = arith.constant 0 : index
    %c0_58 = arith.constant 0 : index
    %44 = vector.load %arg8[%c0_57, %c0_58] : memref<16x128xf32, #tpu.memory_space<vmem>>, vector<16x128xf32>
    tpu.vector_store %arg8[%c0_57, %c0_58], %43 {strides = array<i32>} : memref<16x128xf32, #tpu.memory_space<vmem>>, vector<16x128xf32>,
    %c0_59 = arith.constant 0 : index
    %c0_60 = arith.constant 0 : index
    %45 = vector.load %arg8[%c0_59, %c0_60] : memref<16x128xf32, #tpu.memory_space<vmem>>, vector<16x128xf32>
    %c0_61 = arith.constant 0 : index
    %c0_62 = arith.constant 0 : index
    %c0_63 = arith.constant 0 : index
    %46 = vector.load %arg6[%c0_61, %c0_62, %c0_63] : memref<1x16x128xf32, #tpu.memory_space<vmem>>, vector<1x16x128xf32>
    %47 = vector.shape_cast %46 : vector<1x16x128xf32> to vector<16x128xf32>
    %48 = vector.shape_cast %45 : vector<16x128xf32> to vector<1x16x128xf32>
    tpu.vector_store %arg6[%c0_61, %c0_62, %c0_63], %48 {strides = array<i32>} : memref<1x16x128xf32, #tpu.memory_space<vmem>>, vector<1x16x128xf32>,
    return
  }
  func.func @transform_0(%arg0: i32, %arg1: i32) -> (i32, i32, i32, i32) {
    %c0_i32 = arith.constant 0 : i32
    %c0_i32_0 = arith.constant 0 : i32
    %c0_i32_1 = arith.constant 0 : i32
    return %arg0, %arg1, %c0_i32, %c0_i32_0 : i32, i32, i32, i32
  }
  func.func @transform_1(%arg0: i32, %arg1: i32) -> (i32, i32, i32, i32) {
    %c1_i32 = arith.constant 1 : i32
    %0 = arith.addi %arg1, %c1_i32 : i32
    %c0_i32 = arith.constant 0 : i32
    %c0_i32_0 = arith.constant 0 : i32
    %c0_i32_1 = arith.constant 0 : i32
    return %arg0, %0, %c0_i32, %c0_i32_0 : i32, i32, i32, i32
  }
  func.func @transform_2(%arg0: i32, %arg1: i32) -> (i32, i32, i32) {
    %c0_i32 = arith.constant 0 : i32
    %c0_i32_0 = arith.constant 0 : i32
    %c0_i32_1 = arith.constant 0 : i32
    %c0_i32_2 = arith.constant 0 : i32
    return %c0_i32, %c0_i32_0, %c0_i32_1 : i32, i32, i32
  }
  func.func @transform_3(%arg0: i32, %arg1: i32) -> (i32, i32) {
    %c0_i32 = arith.constant 0 : i32
    %c0_i32_0 = arith.constant 0 : i32
    %c0_i32_1 = arith.constant 0 : i32
    return %c0_i32, %c0_i32_0 : i32, i32
  }
  func.func @transform_4(%arg0: i32, %arg1: i32) -> (i32, i32, i32) {
    %c0_i32 = arith.constant 0 : i32
    %c0_i32_0 = arith.constant 0 : i32
    return %arg0, %arg1, %c0_i32 : i32, i32, i32
  }
}

</mosaic_0001>

<bundles_post_ra>
// kernel: tpu_custom_call.1
= control target key start
LH: loop header
LB: loop body
LE: loop exit
PB: predicated region body
PF: predicated region fallthrough
CT: control target
= control target key end

     0   :  { %9 = vsyncpa [#allocation5], 0  ;;  %s929_s0 = inlined_call_operand.vmem [shape: f32[2,2,16,8], index: 0, kind: input, shape index: {}]   ;;  %s930_s1 = inlined_call_operand.vmem [shape: f32[2,2,16,8], index: 1, kind: input, shape index: {}]   ;;  %s931_s2 = inlined_call_operand.vmem [shape: f32[5,8,128], index: 2, kind: input, shape index: {}]   ;;  %s932_s3 = inlined_call_operand.vmem [shape: f32[1,128], index: 3, kind: input, shape index: {}]   ;;  %s933_s4 = inlined_call_operand.hbm [shape: f32[2,16,128], index: 4, kind: output, shape index: {}]  }
   0x1   :  { %11 = vsyncpa [#allocation5 + $0x1], 0  ;;  %s798_s15 = smov 0   ;;  %s800_s16 = smov 0  }
   0x2   :  { %s802_s17 = smov 0   ;;  %s804_s18 = smov 0  }
   0x3   :  { %s806_s19 = smov 0   ;;  %s808_s20 = smov 0  }
   0x4 LB: > { %s598_s21 = sadd.s32 4294967295, %s769_s20   ;;  %s599_s22 = sadd.s32 4294967294, %s769_s20   ;;  %s769_s20 = sphi %s808_s20, %s17_s20   ;;  %s765_s19 = sphi %s806_s19, %s940_s19   ;;  %s761_s18 = sphi %s804_s18, %s939_s18   ;;  %s757_s17 = sphi %s802_s17, %s938_s17   ;;  %s753_s16 = sphi %s800_s16, %s937_s16   ;;  %s749_s15 = sphi %s798_s15, %s936_s15  }
   0x5   : > { %s29_s23 = sadd.s32 1, %s765_s19  ;;  %s138_s24 = sadd.s32 1, %s757_s17 }
   0x6   : > { %p31_p0 = scmp.ge.s32.totalorder %s29_s23, 2  ;;  %p148_p1 = scmp.ne.s32.totalorder %s757_s17, %s753_s16 }
   0x7   : > { %p149_p2 = scmp.eq.s32.totalorder %s598_s21, 1  ;;  %p154_p3 = scmp.ne.s32.totalorder %s753_s16, %s749_s15 }
   0x8   : > { %s942_s23 = smov (%p31_p0, %s29_s23), 0  ;;  %p155_p5 = scmp.eq.s32.totalorder %s599_s22, 1 }
   0x9   : > { %p838_p4 = por %p149_p2, %p148_p1  ;;  %s133_s26 = ssub.s32 %s765_s19, %s942_s23 }
   0xa   : > { %p602_p6 = scmp.ge.s32.totalorder %s769_s20, 1  ;;  %p136_p7 = scmp.eq.s32.totalorder %s133_s26, 0 }
   0xb   : > { %p845_p8 = por %p155_p5, %p154_p3  ;;  %p205_p9 = scmp.lt.s32.totalorder %s769_s20, 3 }
   0xc   : > { %s851_s28 = scalar_select %p136_p7, %s757_s17, %s138_s24  }
   0xd   : > { %p206_p10 = pnand %p602_p6, %p205_p9 }
   0xe   : > { %p245_p11 = scmp.lt.s32.totalorder (!%p206_p10), %s761_s18, 1  ;;  %s242_s8 = sand.u32 (!%p206_p10), 1, %s753_s16  }
   0xf   : > { %209 = sbr.rel (%p206_p10) target bundleno = 187 (0xbb), region = 36  ;;  %s603_s9 = sshll.u32 (!%p206_p10), %s242_s8, 4 }
  0x10   : > { %s630_s10 = sshll.u32 (!%p206_p10), %s761_s18, 4 }
  0x14   : > { %v283_v0 = vld [vmem:[%s931_s2] sm:$0xff]  ;;  %v610_v1 = vld [vmem:[%s931_s2 + $0x8] sm:$0xff]  ;;  %v613_v2 = vld [vmem:[%s931_s2 + $0x10] sm:$0xff]  ;;  %s246_s13 = scalar_select %p245_p11, %s761_s18, 1  ;;  %vm268_vm0 = vcmask 64512  }
  0x15   : > { %632 = vmatpush.msra.mxu1 %v283_v0  ;;  %383 = vmatpush.msra.mxu2 %v613_v2  ;;  %v616_v3 = vld [vmem:[%s931_s2 + $0x18] sm:$0xff]  ;;  %v619_v4 = vld [vmem:[%s931_s2 + $0x20] sm:$0xff]  ;;  %s478_s18 = scalar_lea.sflag [#allocation5], %s242_s8 }
  0x16   : > { %305 = vmatpush.msra.mxu0 %v283_v0  ;;  %422 = vmatpush.msra.mxu3 %v616_v3  ;;  %s627_s14 = sshll.u32 %s246_s13, 5  ;;  %v690_v20 = vld [vmem:[%s932_s3] ss:$0 sm:$0xff]  ;;  %s491_s13 = scalar_lea.hbm %s933_s4, %s630_s10 }
  0x17   : > { %344 = vmatpush.msrb.mxu1 %v610_v1  ;;  %s253_s24 = scalar_lea.vmem %s929_s0, %s627_s14  ;;  %s629_s26 = sadd.s32 16, %s627_s14 }
  0x18   : > { %461 = vmatpush.msrb.mxu0 %v619_v4  ;;  %v267_v5 = vld [vmem:[%s253_s24 + $0x8] sm:$0xff]  ;;  %v266_v6 = vld [vmem:[%s253_s24] sm:$0xff]  ;;  %s263_s5 = scalar_lea.vmem %s930_s1, %s629_s26  ;;  %s244_s14 = scalar_lea.vmem [#allocation4], %s603_s9 }
  0x19   : > { %270 = vst.msk [vmem:[#allocation2 + $0x8] sm:$0xff] %vm268_vm0, %v267_v5  ;;  %v271_v7 = vld [vmem:[%s263_s5] sm:$0xff]  ;;  %s492_s21 = sshll.u32 %s244_s14, 4  ;;  %s494_s22 = sshll.u32 %s491_s13, 4  ;;  %s493_s21 = int_to_ptr.vmem [resolvable:$true] %s492_s21  ;;  %s495_s22 = int_to_ptr.hbm [resolvable:$true] %s494_s22 }
  0x1a   : > { %269 = vst.msk [vmem:[#allocation2] sm:$0xff] %vm268_vm0, %v266_v6  ;;  %s705_s24 = sshra.s32 %s495_s22, 4  ;;  %s711_s5 = scalar_lea.hbm %s933_s4, 32  ;;  %s706_s24 = int_to_ptr.hbm [resolvable:$true] %s705_s24 }
  0x1b   : > { %272 = vst.msk [vmem:[#allocation2 + $0x10] sm:$0xff] %vm268_vm0, %v271_v7  ;;  %s707_s26 = scalar_lea.hbm %s706_s24, 16  ;;  %p712_p1 = scmp.lt.s32.totalorder %s706_s24, %s933_s4 }
  0x1c   : > { %p708_p12 = scmp.ne.s32.totalorder %s706_s24, %s707_s26  ;;  %p713_p2 = scmp.lt.s32.totalorder %s711_s5, %s707_s26 }
  0x1e   : > { %p709_p13 = pnand %p708_p12, %p838_p4  ;;  %p714_p3 = por %p713_p2, %p712_p1 }
  0x20   : > { %v282_v8 = vld [vmem:[#allocation2 + $0x8] sm:$0xff]  ;;  %p710_p0 = pneg %p709_p13 }
  0x21   : > { %609 = vmatmul.msk.f32.vlgmr.msra.gmra.mxu1 %vm268_vm0, %v282_v8  ;;  %v358_v9 = vld [vmem:[#allocation2 + $0x2] sm:$0xff] }
  0x22   : > { %v281_v10 = vld [vmem:[#allocation2] sm:$0xff]  ;;  %614 = vmatmul.msk.f32.vlgmr.msra.gmra.mxu2 %vm268_vm0, %v358_v9  ;;  %v359_v13 = vld [vmem:[#allocation2 + $0xa] sm:$0xff]  ;;  %p715_p5 = pnand %p714_p3, %p710_p0 }
  0x23   : > { %v397_v11 = vld [vmem:[#allocation2 + $0x3] sm:$0xff]  ;;  %608 = vmatmul.msk.f32.vlgmr.msra.gmra.mxu0 %vm268_vm0, %v281_v10  ;;  %v398_v15 = vld [vmem:[#allocation2 + $0xb] sm:$0xff] }
  0x24   : > { %617 = vmatmul.msk.f32.vlgmr.msra.gmra.mxu3 %vm268_vm0, %v397_v11  ;;  %v319_v12 = vld [vmem:[#allocation2 + $0x1] sm:$0xff]  ;;  %v320_v16 = vld [vmem:[#allocation2 + $0x9] sm:$0xff] }
  0x25   : > { %v436_v14 = vld [vmem:[#allocation2 + $0x4] sm:$0xff]  ;;  %v437_v17 = vld [vmem:[#allocation2 + $0xc] sm:$0xff] }
  0x29   : > { %611 = vmatmul.msk.f32.vlgmr.msrb.gmra.mxu1 %vm268_vm0, %v319_v12 }
  0x2a   : > { %615 = vmatmul.msk.f32.gmra.mxu2 %vm268_vm0, %v359_v13 }
  0x2b   : > { %620 = vmatmul.msk.f32.vlgmr.msrb.gmra.mxu0 %vm268_vm0, %v436_v14 }
  0x2c   : > { %618 = vmatmul.msk.f32.gmra.mxu3 %vm268_vm0, %v398_v15 }
  0x31   : > { %612 = vmatmul.msk.f32.gmra.mxu1 %vm268_vm0, %v320_v16 }
  0x33   : > { %621 = vmatmul.msk.f32.gmra.mxu0 %vm268_vm0, %v437_v17 }
  0x9e   : > { %v310_v18 = vpop.f32.mrf.mxu1 }
  0x9f   : > { %v314_v29 = vadd.f32 %v690_v20, %v310_v18 }
  0xa0   : > { %v307_v19 = vpop.f32.mrf.mxu0 }
  0xa1   : > { %v313_v21 = vadd.f32 %v690_v20, %v307_v19 }
  0xa5   : > { %v385_v22 = vpop.f32.mrf.mxu2 }
  0xa6   : > { %v346_v23 = vpop.f32.mrf.mxu1 }
  0xa7   : > { %v424_v24 = vpop.f32.mrf.mxu3  ;;  %v352_v25 = vadd.f32 %v346_v23, %v313_v21 }
  0xa8   : > { %v463_v26 = vpop.f32.mrf.mxu0 }
  0xa9   : > { %v391_v27 = vadd.f32 %v385_v22, %v352_v25 }
  0xab   : > { %v430_v28 = vadd.f32 %v424_v24, %v391_v27 }
  0xad   : > { %v469_v30 = vadd.f32 %v463_v26, %v430_v28  ;;  %v388_v32 = vpop.f32.mrf.mxu2 }
  0xae   : > { %v349_v31 = vpop.f32.mrf.mxu1 }
  0xaf   : > { %475 = vst [vmem:[%s244_s14] sm:$0xff] %v469_v30  ;;  %v353_v33 = vadd.f32 %v349_v31, %v314_v29  ;;  %v427_v34 = vpop.f32.mrf.mxu3 }
  0xb0   : > { %v466_v36 = vpop.f32.mrf.mxu0 }
  0xb1   : > { %v392_v35 = vadd.f32 %v388_v32, %v353_v33 }
  0xb3   : > { %v431_v37 = vadd.f32 %v427_v34, %v392_v35 }
  0xb5   : > { %v470_v38 = vadd.f32 %v466_v36, %v431_v37 }
  0xb7   : > { %476 = vst [vmem:[%s244_s14 + $0x8] sm:$0xff] %v470_v38 }
  0xb8   : > { %718 = shalt.err (!%p715_p5)
}
  0xb9   : > { %s771_s8 = smov 128   ;;  %s772_s9 = smov 8  }
  0xba   : > { %633 = dma.vmem_to_hbm [thread:$0]  (%p838_p4), %s493_s21, 256, %s495_s22, %s478_s18, %s771_s8, %s771_s8, %s772_s9  }
  0xbb PF: > { %p639_p6 = scmp.ge.s32.totalorder %s769_s20, 2  ;;  %s509_s10 = sand.u32 1, %s749_s15  }
  0xbc   : > { %s510_s11 = scalar_lea.sflag [#allocation5], %s509_s10 }
  0xbd   : > { %p636_p7 = pnand %p639_p6, %p845_p8 }
  0xbf   : > { %p637_p9 = pneg %p636_p7 }
  0xc1   : > { %744 = dma.done.wait (%p637_p9), %s510_s11, 256  }
  0xc2   : > { %746 = vsyncadd (%p637_p9), %s510_s11, 4294967040  ;;  %s17_s20 = sadd.s32 1, %s769_s20   ;;  %s936_s15 = smov %s753_s16 }
  0xc3   : > { %p14_p10 = scmp.ge.s32.totalorder %s17_s20, 4   ;;  %s937_s16 = smov %s757_s17 }
  0xc4   : > { %s938_s17 = smov %s851_s28  ;;  %s939_s18 = smov %s765_s19 }
  0xc5   : > { %s940_s19 = smov %s942_s23  ;;  %16 = sbr.rel (!%p14_p10) target bundleno = 4 (0x4), region = 78 }
  0xca   :  { %516 = vsyncpa [#allocation5], 1 }
  0xcb   :  { %518 = vsyncpa [#allocation5 + $0x1], 1 }

</bundles_post_ra>
